<compile_context>
chip_gen: v7x
topology: tpu7x:2x2x1
jax: 0.10.0
libtpu: 0.0.40
codegen_flags: <defaults>
</compile_context>

<pallas_src>
import jax
import jax.numpy as jnp
from jax import lax
from jax.experimental import pallas as pl
from jax.experimental.pallas import tpu as pltpu

# ---- module hyper-parameters (small synthetic sizes) ----
NFEAT, EFEAT, TFEAT = 32, 16, 16
N_HEAD = 2
QDIM = NFEAT + TFEAT               # embed_dim  = 48
KDIM = NFEAT + EFEAT + TFEAT       # kdim/vdim  = 64
HEAD_DIM = QDIM // N_HEAD          # 24
KVCOLS = 2 * QDIM                  # fused K|V projection width = 96
OUT_PAD = 128                      # lane-dense output width (>= NFEAT)
B, L = 16, 16                      # batch, neighbor sequence length

# ---- packed-weight slab layout (all row offsets are multiples of 8) ----
R_WQ, R_WKV, R_WF = 0, 48, 112          # [48,96], [64,96], [96,32] (fused Wo@W1h)
R_W1X, R_W2 = 208, 240                  # [32,32], [32,128]
R_SELQ, R_SELV = 272, 288               # per-head selector rows at +8*h
R_BQ, R_BKV, R_BF, R_B1, R_B2 = 304, 312, 320, 328, 336
SLAB_ROWS, SLAB_COLS = 344, 128


def temporal_attention_kernel(q_ref, kv_ref, bias_ref, valid_ref, w_ref, z_ref):
    tb = q_ref.shape[0]
    lcols = bias_ref.shape[1]          # tb * L (flattened keys of this batch tile)
    l = lcols // tb                    # neighbors per row (static)

    # --- packed weights (static, tile-aligned ref slices) ---
    wq = w_ref[R_WQ:R_WQ + QDIM, :KVCOLS]        # [48, 96]  Wq.T*scale | zeros
    wkv = w_ref[R_WKV:R_WKV + KDIM, :KVCOLS]     # [64, 96]  Wk.T | Wv.T
    wf = w_ref[R_WF:R_WF + KVCOLS, :NFEAT]       # [96, 32]  zeros ; Wo.T @ W1h
    w1x = w_ref[R_W1X:R_W1X + NFEAT, :NFEAT]     # [32, 32]
    w2 = w_ref[R_W2:R_W2 + NFEAT, :OUT_PAD]      # [32, 128] W2.T | zeros
    bq = w_ref[R_BQ:R_BQ + 1, :KVCOLS]
    bkv = w_ref[R_BKV:R_BKV + 1, :KVCOLS]
    bf = w_ref[R_BF:R_BF + 1, :NFEAT]
    b1 = w_ref[R_B1:R_B1 + 1, :NFEAT]
    b2 = w_ref[R_B2:R_B2 + 1, :OUT_PAD]

    # --- fused projections (q pre-scaled by 1/sqrt(head_dim) in the slab) ---
    q96 = jnp.dot(q_ref[...], wq, preferred_element_type=jnp.float32) + bq      # [tb, 96]
    kvp = jnp.dot(kv_ref[...], wkv, preferred_element_type=jnp.float32) + bkv   # [tb*L, 96]

    # --- additive block-diagonal + key-padding mask over [tb, tb*L] ---
    # row b may only attend to flat keys b*L .. b*L+L-1; padded slots get -1e30
    # from the precomputed lane-dense key bias (fully-padded rows already have
    # their last slot un-masked by the wrapper).
    row = lax.broadcasted_iota(jnp.int32, (tb, lcols), 0)
    col = lax.broadcasted_iota(jnp.int32, (tb, lcols), 1)
    in_block = (col >= row * l) & (col < (row + 1) * l)
    addmask = jnp.where(in_block, bias_ref[...], jnp.float32(-1e30))            # [tb, tb*L]

    # --- per-head scores / softmax / AV as dense 2-D MXU matmuls ---
    attn96 = None
    for h in range(N_HEAD):                              # static unroll (N_HEAD = 2)
        selq_h = w_ref[R_SELQ + 8 * h:R_SELQ + 8 * h + 1, :KVCOLS]   # [1, 96]
        selv_h = w_ref[R_SELV + 8 * h:R_SELV + 8 * h + 1, :KVCOLS]   # [1, 96]
        q_h = q96 * selq_h                               # only head-h K lanes survive
        # NT contraction: no explicit transpose of the big kvp block.
        s = lax.dot_general(q_h, kvp, (((1,), (1,)), ((), ())),
                            preferred_element_type=jnp.float32)      # [tb, tb*L]
        s = s + addmask
        m = jnp.max(s, axis=-1, keepdims=True)
        e = jnp.exp(s - m)                               # off-block entries -> exactly 0
        p = e * pl.reciprocal(jnp.sum(e, axis=-1, keepdims=True), approx=True)
        o_h = jnp.dot(p, kvp, preferred_element_type=jnp.float32)    # [tb, 96]
        c = o_h * selv_h                                 # only head-h V lanes survive
        attn96 = c if attn96 is None else attn96 + c

    # --- fused out-projection + fc1 attn branch; invalid rows zeroed FIRST ---
    h1_attn = jnp.dot(attn96, wf, preferred_element_type=jnp.float32) + bf      # [tb, 32]
    h1_attn = h1_attn * valid_ref[...]                   # masked_fill(invalid, 0) of h
    qx = q_ref[:, :NFEAT]
    h1 = jnp.maximum(
        h1_attn + jnp.dot(qx, w1x, preferred_element_type=jnp.float32) + b1, 0.0)
    z = jnp.dot(h1, w2, preferred_element_type=jnp.float32) + b2                # [tb, 128]
    z_ref[...] = z.astype(z_ref.dtype)                   # lane-dense store


def pack_params(params):
    """Pre-transpose / fuse / pad all parameters into one [344, 128] f32 slab."""
    wq, bq, wk, bk, wv, bv, wo, bo, w1, b1, w2, b2 = params
    scale = 1.0 / float(HEAD_DIM) ** 0.5
    w1h = w1[:, :QDIM].T            # [48, 32]  fc1 weight on the attention branch
    w1x_t = w1[:, QDIM:].T          # [32, 32]  fc1 weight on the qx branch
    w_fused = wo.T @ w1h            # [48, 32]  out_proj folded into fc1 (exact)
    b_fused = bo @ w1h              # [1, 32]
    slab = jnp.zeros((SLAB_ROWS, SLAB_COLS), jnp.float32)
    slab = slab.at[R_WQ:R_WQ + QDIM, :QDIM].set(wq.T * scale)
    slab = slab.at[R_WKV:R_WKV + KDIM, :QDIM].set(wk.T)
    slab = slab.at[R_WKV:R_WKV + KDIM, QDIM:KVCOLS].set(wv.T)
    slab = slab.at[R_WF + QDIM:R_WF + KVCOLS, :NFEAT].set(w_fused)  # K-lane rows stay 0
    slab = slab.at[R_W1X:R_W1X + NFEAT, :NFEAT].set(w1x_t)
    slab = slab.at[R_W2:R_W2 + NFEAT, :NFEAT].set(w2.T)
    # 0/1 head selectors over the fused 96 projection lanes (one 8-aligned row per head)
    for h in range(N_HEAD):
        slab = slab.at[R_SELQ + 8 * h, h * HEAD_DIM:(h + 1) * HEAD_DIM].set(1.0)
        slab = slab.at[R_SELV + 8 * h,
                       QDIM + h * HEAD_DIM:QDIM + (h + 1) * HEAD_DIM].set(1.0)
    slab = slab.at[R_BQ, :QDIM].set(bq[0] * scale)
    slab = slab.at[R_BKV, :QDIM].set(bk[0])
    slab = slab.at[R_BKV, QDIM:KVCOLS].set(bv[0])
    slab = slab.at[R_BF, :NFEAT].set(b_fused[0])
    slab = slab.at[R_B1, :NFEAT].set(b1[0])
    slab = slab.at[R_B2, :NFEAT].set(b2[0])
    return slab


def temporal_attention(qx, qt, kx, ky, kt, padding_mask, slab):
    batch, seq = padding_mask.shape
    q_in = jnp.concatenate([qx, qt], axis=1)                          # [B, QDIM]
    kv_flat = jnp.concatenate([kx, ky, kt], axis=2).reshape(batch * seq, KDIM)

    # Key-padding preprocessing (one tiny fused XLA op): replaces the in-kernel
    # cross-lane mask reduction and the sub-128-lane mask block of v2.
    pm = padding_mask > 0.5
    invalid = jnp.all(pm, axis=1, keepdims=True)                      # [B, 1]
    last = jnp.arange(seq)[None, :] == seq - 1
    pm_adj = pm & jnp.logical_not(invalid & last)                     # un-mask last slot
    key_bias = jnp.where(pm_adj, jnp.float32(-1e30),
                         jnp.float32(0.0)).reshape(1, batch * seq)    # lane-dense [1, B*L]
    valid = jnp.where(invalid, 0.0, 1.0).astype(jnp.float32)          # [B, 1]

    # Single grid step at this size (dual-TC split / more steps only adds the
    # ~0.35us per-step overhead + an extra slab copy).  When scaling B up:
    # split the batch over a "parallel" grid only once per-core work is a few
    # hundred rows, and cap tb so the [tb, tb*L] f32 score block stays inside
    # VMEM (tb <= ~128-256 on v7x's 64 MiB; ~512 on v5e/v6e with
    # vmem_limit_bytes raised via pltpu.CompilerParams).
    tb = batch
    grid = (batch // tb,)

    in_specs = [
        pl.BlockSpec((tb, QDIM), lambda i: (i, 0)),
        pl.BlockSpec((tb * seq, KDIM), lambda i: (i, 0)),
        pl.BlockSpec((1, tb * seq), lambda i: (0, i)),
        pl.BlockSpec((tb, 1), lambda i: (i, 0)),
        pl.BlockSpec((SLAB_ROWS, SLAB_COLS), lambda i: (0, 0)),
    ]
    out_spec = pl.BlockSpec((tb, OUT_PAD), lambda i: (i, 0))

    z_pad = pl.pallas_call(
        temporal_attention_kernel,
        out_shape=jax.ShapeDtypeStruct((batch, OUT_PAD), jnp.float32),
        grid_spec=pltpu.PrefetchScalarGridSpec(
            num_scalar_prefetch=0,
            grid=grid,
            in_specs=in_specs,
            out_specs=out_spec,
        ),
        compiler_params=pltpu.CompilerParams(dimension_semantics=("parallel",)),
    )(q_in, kv_flat, key_bias, valid, slab)
    # Consumers that accept a 128-lane padded activation can read z_pad
    # directly and skip this (separate XLA copy) slice.
    return z_pad[:, :NFEAT]


def reference(qx, qt, kx, ky, kt, mask, params):
    """Pure-JAX reference mirroring the PyTorch forward (eval mode)."""
    wq, bq, wk, bk, wv, bv, wo, bo, w1, b1, w2, b2 = params
    q = jnp.concatenate([qx, qt], axis=1)
    kv = jnp.concatenate([kx, ky, kt], axis=2)
    invalid = jnp.all(mask > 0.5, axis=1, keepdims=True)
    col = jnp.arange(L)[None, :]
    mask_adj = jnp.where(invalid & (col == L - 1), 0.0, mask)
    qp = (q @ wq.T + bq).reshape(B, N_HEAD, HEAD_DIM)
    kp = (jnp.einsum('blk,ek->ble', kv, wk) + bk).reshape(B, L, N_HEAD, HEAD_DIM)
    vp = (jnp.einsum('blk,ek->ble', kv, wv) + bv).reshape(B, L, N_HEAD, HEAD_DIM)
    scores = jnp.einsum('bhd,blhd->bhl', qp, kp) / (HEAD_DIM ** 0.5)
    scores = jnp.where(mask_adj[:, None, :] > 0.5, -1e30, scores)
    attn = jax.nn.softmax(scores, axis=-1)
    out = jnp.einsum('bhl,blhd->bhd', attn, vp).reshape(B, QDIM)
    h = out @ wo.T + bo
    h = jnp.where(invalid, 0.0, h)
    x = jnp.concatenate([h, qx], axis=1)
    h1 = jax.nn.relu(x @ w1.T + b1)
    return h1 @ w2.T + b2


if __name__ == "__main__":
    key = jax.random.PRNGKey(0)
    ks = jax.random.split(key, 20)

    def u(k, shape, s=0.2):
        return jax.random.uniform(k, shape, jnp.float32, -s, s)

    # deterministic synthetic parameters (nn.MultiheadAttention with
    # kdim/vdim != embed_dim, plus the MergeLayer MLP)
    params = (
        u(ks[0], (QDIM, QDIM)),            u(ks[1], (1, QDIM)),    # Wq, bq
        u(ks[2], (QDIM, KDIM)),            u(ks[3], (1, QDIM)),    # Wk, bk
        u(ks[4], (QDIM, KDIM)),            u(ks[5], (1, QDIM)),    # Wv, bv
        u(ks[6], (QDIM, QDIM)),            u(ks[7], (1, QDIM)),    # Wo, bo
        u(ks[8], (NFEAT, QDIM + NFEAT)),   u(ks[9], (1, NFEAT)),   # merger fc1
        u(ks[10], (NFEAT, NFEAT)),         u(ks[11], (1, NFEAT)),  # merger fc2
    )

    qx = jax.random.normal(ks[12], (B, NFEAT), jnp.float32)
    qt = jax.random.normal(ks[13], (B, TFEAT), jnp.float32)
    kx = jax.random.normal(ks[14], (B, L, NFEAT), jnp.float32)
    ky = jax.random.normal(ks[15], (B, L, EFEAT), jnp.float32)
    kt = jax.random.normal(ks[16], (B, L, TFEAT), jnp.float32)

    lengths = jax.random.randint(ks[17], (B,), 1, L + 1)
    lengths = lengths.at[0].set(0)  # one fully padded row exercises invalid-row path
    padding_mask = (jnp.arange(L)[None, :] >= lengths[:, None]).astype(jnp.float32)

    slab = pack_params(params)
    z = temporal_attention(qx, qt, kx, ky, kt, padding_mask, slab)
    z = jax.block_until_ready(z)

    z_ref = reference(qx, qt, kx, ky, kt, padding_mask, params)
    assert z.shape == (B, NFEAT)
    # slightly relaxed tolerance: approx reciprocal in the in-kernel softmax
    assert jnp.allclose(z, z_ref, atol=5e-3, rtol=5e-3), \
        f"max abs err {jnp.max(jnp.abs(z - z_ref))}"

    print("KERNEL_OK")
</pallas_src>

<mosaic_0001>
module attributes {stable_mosaic.version = 11 : i64} {
  func.func @temporal_attention_kernel(%arg0: i32, %arg1: memref<16x48xf32, #tpu.memory_space<vmem>>, %arg2: memref<256x64xf32, #tpu.memory_space<vmem>>, %arg3: memref<1x256xf32, #tpu.memory_space<vmem>>, %arg4: memref<16x1xf32, #tpu.memory_space<vmem>>, %arg5: memref<344x128xf32, #tpu.memory_space<vmem>>, %arg6: memref<16x128xf32, #tpu.memory_space<vmem>>) attributes {dimension_semantics = [#tpu.dimension_semantics<parallel>], iteration_bounds = array<i64: 1>, scalar_prefetch = 0 : i64, scratch_operands = 0 : i64, tpu.core_type = #tpu.core_type<tc>, window_params = [{transform_indices = @transform_0, window_bounds = array<i64: 16, 48>}, {transform_indices = @transform_1, window_bounds = array<i64: 256, 64>}, {transform_indices = @transform_2, window_bounds = array<i64: 1, 256>}, {transform_indices = @transform_3, window_bounds = array<i64: 16, 1>}, {pipeline_mode = #tpu.pipeline_mode<synchronous>, transform_indices = @transform_4, window_bounds = array<i64: 344, 128>}, {transform_indices = @transform_5, window_bounds = array<i64: 16, 128>}]} {
    %c0 = arith.constant 0 : index
    %c0_0 = arith.constant 0 : index
    %0 = vector.load %arg5[%c0, %c0_0] : memref<344x128xf32, #tpu.memory_space<vmem>>, vector<48x96xf32>
    %c48 = arith.constant 48 : index
    %c0_1 = arith.constant 0 : index
    %1 = vector.load %arg5[%c48, %c0_1] : memref<344x128xf32, #tpu.memory_space<vmem>>, vector<64x96xf32>
    %c112 = arith.constant 112 : index
    %c0_2 = arith.constant 0 : index
    %2 = vector.load %arg5[%c112, %c0_2] : memref<344x128xf32, #tpu.memory_space<vmem>>, vector<96x32xf32>
    %c208 = arith.constant 208 : index
    %c0_3 = arith.constant 0 : index
    %3 = vector.load %arg5[%c208, %c0_3] : memref<344x128xf32, #tpu.memory_space<vmem>>, vector<32x32xf32>
    %c240 = arith.constant 240 : index
    %c0_4 = arith.constant 0 : index
    %4 = vector.load %arg5[%c240, %c0_4] : memref<344x128xf32, #tpu.memory_space<vmem>>, vector<32x128xf32>
    %c304 = arith.constant 304 : index
    %c0_5 = arith.constant 0 : index
    %5 = vector.load %arg5[%c304, %c0_5] : memref<344x128xf32, #tpu.memory_space<vmem>>, vector<1x96xf32>
    %c312 = arith.constant 312 : index
    %c0_6 = arith.constant 0 : index
    %6 = vector.load %arg5[%c312, %c0_6] : memref<344x128xf32, #tpu.memory_space<vmem>>, vector<1x96xf32>
    %c320 = arith.constant 320 : index
    %c0_7 = arith.constant 0 : index
    %7 = vector.load %arg5[%c320, %c0_7] : memref<344x128xf32, #tpu.memory_space<vmem>>, vector<1x32xf32>
    %c328 = arith.constant 328 : index
    %c0_8 = arith.constant 0 : index
    %8 = vector.load %arg5[%c328, %c0_8] : memref<344x128xf32, #tpu.memory_space<vmem>>, vector<1x32xf32>
    %c336 = arith.constant 336 : index
    %c0_9 = arith.constant 0 : index
    %9 = vector.load %arg5[%c336, %c0_9] : memref<344x128xf32, #tpu.memory_space<vmem>>, vector<1x128xf32>
    %c0_10 = arith.constant 0 : index
    %c0_11 = arith.constant 0 : index
    %10 = vector.load %arg1[%c0_10, %c0_11] : memref<16x48xf32, #tpu.memory_space<vmem>>, vector<16x48xf32>
    %cst = arith.constant dense<0.000000e+00> : vector<16x96xf32>
    %11 = tpu.matmul %10, %0, %cst {dimension_numbers = #tpu.dot_dimension_numbers<[1], [0], [0], [1], [0, 0, 1, 1], [], []>} : vector<16x48xf32>, vector<48x96xf32>, vector<16x96xf32> -> vector<16x96xf32>
    %12 = vector.broadcast %5 : vector<1x96xf32> to vector<16x96xf32>
    %13 = arith.addf %11, %12 : vector<16x96xf32>
    %c0_12 = arith.constant 0 : index
    %c0_13 = arith.constant 0 : index
    %14 = vector.load %arg2[%c0_12, %c0_13] : memref<256x64xf32, #tpu.memory_space<vmem>>, vector<256x64xf32>
    %cst_14 = arith.constant dense<0.000000e+00> : vector<256x96xf32>
    %15 = tpu.matmul %14, %1, %cst_14 {dimension_numbers = #tpu.dot_dimension_numbers<[1], [0], [0], [1], [0, 0, 1, 1], [], []>} : vector<256x64xf32>, vector<64x96xf32>, vector<256x96xf32> -> vector<256x96xf32>
    %16 = vector.broadcast %6 : vector<1x96xf32> to vector<256x96xf32>
    %17 = arith.addf %15, %16 : vector<256x96xf32>
    %18 = tpu.iota {dimensions = array<i32: 0>} : vector<16x256xi32>
    %19 = tpu.iota {dimensions = array<i32: 1>} : vector<16x256xi32>
    %c16_i32 = arith.constant 16 : i32
    %20 = vector.broadcast %c16_i32 : i32 to vector<16x256xi32>
    %21 = arith.muli %18, %20 : vector<16x256xi32>
    %22 = arith.cmpi sge, %19, %21 : vector<16x256xi32>
    %c1_i32 = arith.constant 1 : i32
    %23 = vector.broadcast %c1_i32 : i32 to vector<16x256xi32>
    %24 = arith.addi %18, %23 : vector<16x256xi32>
    %c16_i32_15 = arith.constant 16 : i32
    %25 = vector.broadcast %c16_i32_15 : i32 to vector<16x256xi32>
    %26 = arith.muli %24, %25 : vector<16x256xi32>
    %27 = arith.cmpi slt, %19, %26 : vector<16x256xi32>
    %28 = arith.andi %22, %27 : vector<16x256xi1>
    %c0_16 = arith.constant 0 : index
    %c0_17 = arith.constant 0 : index
    %29 = vector.load %arg3[%c0_16, %c0_17] : memref<1x256xf32, #tpu.memory_space<vmem>>, vector<1x256xf32>
    %cst_18 = arith.constant -1.000000e+30 : f32
    %30 = vector.shape_cast %29 : vector<1x256xf32> to vector<1x256xf32>
    %31 = vector.broadcast %30 : vector<1x256xf32> to vector<16x256xf32>
    %32 = vector.broadcast %cst_18 : f32 to vector<16x256xf32>
    %33 = arith.select %28, %31, %32 : vector<16x256xi1>, vector<16x256xf32>
    %c272 = arith.constant 272 : index
    %c0_19 = arith.constant 0 : index
    %34 = vector.load %arg5[%c272, %c0_19] : memref<344x128xf32, #tpu.memory_space<vmem>>, vector<1x96xf32>
    %c288 = arith.constant 288 : index
    %c0_20 = arith.constant 0 : index
    %35 = vector.load %arg5[%c288, %c0_20] : memref<344x128xf32, #tpu.memory_space<vmem>>, vector<1x96xf32>
    %36 = vector.broadcast %34 : vector<1x96xf32> to vector<16x96xf32>
    %37 = arith.mulf %13, %36 : vector<16x96xf32>
    %cst_21 = arith.constant dense<0.000000e+00> : vector<16x256xf32>
    %38 = tpu.matmul %37, %17, %cst_21 {dimension_numbers = #tpu.dot_dimension_numbers<[1], [1], [0], [0], [0, 0, 1, 0], [], []>} : vector<16x96xf32>, vector<256x96xf32>, vector<16x256xf32> -> vector<16x256xf32>
    %39 = arith.addf %38, %33 : vector<16x256xf32>
    %cst_22 = arith.constant dense<0xFF800000> : vector<16xf32>
    %40 = vector.multi_reduction <maximumf>, %39, %cst_22 [1] : vector<16x256xf32> to vector<16xf32>
    %41 = vector.shape_cast %40 : vector<16xf32> to vector<16x1xf32>
    %42 = vector.broadcast %41 : vector<16x1xf32> to vector<16x256xf32>
    %43 = arith.subf %39, %42 : vector<16x256xf32>
    %44 = math.exp %43 : vector<16x256xf32>
    %cst_23 = arith.constant dense<0.000000e+00> : vector<16xf32>
    %45 = vector.multi_reduction <add>, %44, %cst_23 [1] : vector<16x256xf32> to vector<16xf32>
    %46 = vector.shape_cast %45 : vector<16xf32> to vector<16x1xf32>
    %47 = tpu.reciprocal %46 {approx = true} : vector<16x1xf32> -> vector<16x1xf32>
    %48 = vector.broadcast %47 : vector<16x1xf32> to vector<16x256xf32>
    %49 = arith.mulf %44, %48 : vector<16x256xf32>
    %cst_24 = arith.constant dense<0.000000e+00> : vector<16x96xf32>
    %50 = tpu.matmul %49, %17, %cst_24 {dimension_numbers = #tpu.dot_dimension_numbers<[1], [0], [0], [1], [0, 0, 1, 1], [], []>} : vector<16x256xf32>, vector<256x96xf32>, vector<16x96xf32> -> vector<16x96xf32>
    %51 = vector.broadcast %35 : vector<1x96xf32> to vector<16x96xf32>
    %52 = arith.mulf %50, %51 : vector<16x96xf32>
    %c280 = arith.constant 280 : index
    %c0_25 = arith.constant 0 : index
    %53 = vector.load %arg5[%c280, %c0_25] : memref<344x128xf32, #tpu.memory_space<vmem>>, vector<1x96xf32>
    %c296 = arith.constant 296 : index
    %c0_26 = arith.constant 0 : index
    %54 = vector.load %arg5[%c296, %c0_26] : memref<344x128xf32, #tpu.memory_space<vmem>>, vector<1x96xf32>
    %55 = vector.broadcast %53 : vector<1x96xf32> to vector<16x96xf32>
    %56 = arith.mulf %13, %55 : vector<16x96xf32>
    %cst_27 = arith.constant dense<0.000000e+00> : vector<16x256xf32>
    %57 = tpu.matmul %56, %17, %cst_27 {dimension_numbers = #tpu.dot_dimension_numbers<[1], [1], [0], [0], [0, 0, 1, 0], [], []>} : vector<16x96xf32>, vector<256x96xf32>, vector<16x256xf32> -> vector<16x256xf32>
    %58 = arith.addf %57, %33 : vector<16x256xf32>
    %cst_28 = arith.constant dense<0xFF800000> : vector<16xf32>
    %59 = vector.multi_reduction <maximumf>, %58, %cst_28 [1] : vector<16x256xf32> to vector<16xf32>
    %60 = vector.shape_cast %59 : vector<16xf32> to vector<16x1xf32>
    %61 = vector.broadcast %60 : vector<16x1xf32> to vector<16x256xf32>
    %62 = arith.subf %58, %61 : vector<16x256xf32>
    %63 = math.exp %62 : vector<16x256xf32>
    %cst_29 = arith.constant dense<0.000000e+00> : vector<16xf32>
    %64 = vector.multi_reduction <add>, %63, %cst_29 [1] : vector<16x256xf32> to vector<16xf32>
    %65 = vector.shape_cast %64 : vector<16xf32> to vector<16x1xf32>
    %66 = tpu.reciprocal %65 {approx = true} : vector<16x1xf32> -> vector<16x1xf32>
    %67 = vector.broadcast %66 : vector<16x1xf32> to vector<16x256xf32>
    %68 = arith.mulf %63, %67 : vector<16x256xf32>
    %cst_30 = arith.constant dense<0.000000e+00> : vector<16x96xf32>
    %69 = tpu.matmul %68, %17, %cst_30 {dimension_numbers = #tpu.dot_dimension_numbers<[1], [0], [0], [1], [0, 0, 1, 1], [], []>} : vector<16x256xf32>, vector<256x96xf32>, vector<16x96xf32> -> vector<16x96xf32>
    %70 = vector.broadcast %54 : vector<1x96xf32> to vector<16x96xf32>
    %71 = arith.mulf %69, %70 : vector<16x96xf32>
    %72 = arith.addf %52, %71 : vector<16x96xf32>
    %cst_31 = arith.constant dense<0.000000e+00> : vector<16x32xf32>
    %73 = tpu.matmul %72, %2, %cst_31 {dimension_numbers = #tpu.dot_dimension_numbers<[1], [0], [0], [1], [0, 0, 1, 1], [], []>} : vector<16x96xf32>, vector<96x32xf32>, vector<16x32xf32> -> vector<16x32xf32>
    %74 = vector.broadcast %7 : vector<1x32xf32> to vector<16x32xf32>
    %75 = arith.addf %73, %74 : vector<16x32xf32>
    %c0_32 = arith.constant 0 : index
    %c0_33 = arith.constant 0 : index
    %76 = vector.load %arg4[%c0_32, %c0_33] : memref<16x1xf32, #tpu.memory_space<vmem>>, vector<16x1xf32>
    %77 = vector.broadcast %76 : vector<16x1xf32> to vector<16x32xf32>
    %78 = arith.mulf %75, %77 : vector<16x32xf32>
    %c0_34 = arith.constant 0 : index
    %c0_35 = arith.constant 0 : index
    %79 = vector.load %arg1[%c0_34, %c0_35] : memref<16x48xf32, #tpu.memory_space<vmem>>, vector<16x32xf32>
    %cst_36 = arith.constant dense<0.000000e+00> : vector<16x32xf32>
    %80 = tpu.matmul %79, %3, %cst_36 {dimension_numbers = #tpu.dot_dimension_numbers<[1], [0], [0], [1], [0, 0, 1, 1], [], []>} : vector<16x32xf32>, vector<32x32xf32>, vector<16x32xf32> -> vector<16x32xf32>
    %81 = arith.addf %78, %80 : vector<16x32xf32>
    %82 = vector.broadcast %8 : vector<1x32xf32> to vector<16x32xf32>
    %83 = arith.addf %81, %82 : vector<16x32xf32>
    %cst_37 = arith.constant 0.000000e+00 : f32
    %84 = vector.broadcast %cst_37 : f32 to vector<16x32xf32>
    %85 = arith.maximumf %83, %84 : vector<16x32xf32>
    %cst_38 = arith.constant dense<0.000000e+00> : vector<16x128xf32>
    %86 = tpu.matmul %85, %4, %cst_38 {dimension_numbers = #tpu.dot_dimension_numbers<[1], [0], [0], [1], [0, 0, 1, 1], [], []>} : vector<16x32xf32>, vector<32x128xf32>, vector<16x128xf32> -> vector<16x128xf32>
    %87 = vector.broadcast %9 : vector<1x128xf32> to vector<16x128xf32>
    %88 = arith.addf %86, %87 : vector<16x128xf32>
    %c0_39 = arith.constant 0 : index
    %c0_40 = arith.constant 0 : index
    %89 = vector.load %arg6[%c0_39, %c0_40] : memref<16x128xf32, #tpu.memory_space<vmem>>, vector<16x128xf32>
    tpu.vector_store %arg6[%c0_39, %c0_40], %88 {strides = array<i32>} : memref<16x128xf32, #tpu.memory_space<vmem>>, vector<16x128xf32>,
    return
  }
  func.func @transform_0(%arg0: i32) -> (i32, i32) {
    %c0_i32 = arith.constant 0 : i32
    %c0_i32_0 = arith.constant 0 : i32
    return %arg0, %c0_i32 : i32, i32
  }
  func.func @transform_1(%arg0: i32) -> (i32, i32) {
    %c0_i32 = arith.constant 0 : i32
    %c0_i32_0 = arith.constant 0 : i32
    return %arg0, %c0_i32 : i32, i32
  }
  func.func @transform_2(%arg0: i32) -> (i32, i32) {
    %c0_i32 = arith.constant 0 : i32
    %c0_i32_0 = arith.constant 0 : i32
    return %c0_i32, %arg0 : i32, i32
  }
  func.func @transform_3(%arg0: i32) -> (i32, i32) {
    %c0_i32 = arith.constant 0 : i32
    %c0_i32_0 = arith.constant 0 : i32
    return %arg0, %c0_i32 : i32, i32
  }
  func.func @transform_4(%arg0: i32) -> (i32, i32) {
    %c0_i32 = arith.constant 0 : i32
    %c0_i32_0 = arith.constant 0 : i32
    %c0_i32_1 = arith.constant 0 : i32
    return %c0_i32, %c0_i32_0 : i32, i32
  }
  func.func @transform_5(%arg0: i32) -> (i32, i32) {
    %c0_i32 = arith.constant 0 : i32
    %c0_i32_0 = arith.constant 0 : i32
    return %arg0, %c0_i32 : i32, i32
  }
}

</mosaic_0001>

<bundles_post_ra>
// kernel: tpu_custom_call.1
= control target key start
LH: loop header
LB: loop body
LE: loop exit
PB: predicated region body
PF: predicated region fallthrough
CT: control target
= control target key end

     0   :  { %vm184_vm0 = vcmask 523264   ;;  %vm66_vm1 = vcmask 392192   ;;  %s2648_s0 = inlined_call_operand.vmem [shape: f32[16,48], index: 0, kind: input, shape index: {}]   ;;  %s2649_s1 = inlined_call_operand.vmem [shape: f32[256,64], index: 1, kind: input, shape index: {}]   ;;  %s2650_s2 = inlined_call_operand.vmem [shape: f32[1,256], index: 2, kind: input, shape index: {}]   ;;  %s2651_s3 = inlined_call_operand.vmem [shape: f32[16,1], index: 3, kind: input, shape index: {}]   ;;  %s2652_s4 = inlined_call_operand.vmem [shape: f32[344,128], index: 4, kind: input, shape index: {}]   ;;  %s2653_s5 = inlined_call_operand.hbm [shape: f32[16,128], index: 5, kind: output, shape index: {}]  }
   0x1   :  { %v27_v0 = vld [vmem:[%s2652_s4 + $0x30] sm:$0xff]  ;;  %v28_v1 = vld [vmem:[%s2652_s4 + $0x38] sm:$0xff]  ;;  %v29_v2 = vld [vmem:[%s2652_s4 + $0x40] sm:$0xff] }
   0x2   :  { %v1820_v3 = vpack.c.bf16 %v28_v1, %v27_v0  ;;  %v30_v4 = vld [vmem:[%s2652_s4 + $0x48] sm:$0xff]  ;;  %v31_v6 = vld [vmem:[%s2652_s4 + $0x50] sm:$0xff]  ;;  %v32_v7 = vld [vmem:[%s2652_s4 + $0x58] sm:$0xff] }
   0x3   :  { %v1824_v5 = vpack.c.bf16 %v30_v4, %v29_v2  ;;  %v148_v8 = vld [vmem:[%s2649_s1] sm:$0xff]  ;;  %v1828_v9 = vpack.c.bf16 %v32_v7, %v31_v6  ;;  %v34_v11 = vld [vmem:[%s2652_s4 + $0x68] sm:$0xff]  ;;  %v23_v16 = vld [vmem:[%s2652_s4 + $0x10] sm:$0xff] }
   0x4   :  { %1821 = vmatprep.subr.bf16.mxu1 %v1820_v3  ;;  %1711 = vmatprep.mubr.msk.f32.mxu1 %vm184_vm0, %v148_v8  ;;  %v33_v10 = vld [vmem:[%s2652_s4 + $0x60] sm:$0xff]  ;;  %v22_v14 = vld [vmem:[%s2652_s4 + $0x8] sm:$0xff]  ;;  %v24_v17 = vld [vmem:[%s2652_s4 + $0x18] sm:$0xff] }
   0x5   :  { %1823 = vmatpush3.bf16.msra.mxu1 %v1820_v3  ;;  %v1832_v12 = vpack.c.bf16 %v34_v11, %v33_v10  ;;  %v21_v13 = vld [vmem:[%s2652_s4] sm:$0xff]  ;;  %v1812_v18 = vpack.c.bf16 %v24_v17, %v23_v16  ;;  %v26_v20 = vld [vmem:[%s2652_s4 + $0x28] sm:$0xff] }
   0x6   :  { %1825 = vmatprep.subr.bf16.mxu1 %v1824_v5  ;;  %v1808_v15 = vpack.c.bf16 %v22_v14, %v21_v13  ;;  %v25_v19 = vld [vmem:[%s2652_s4 + $0x20] sm:$0xff]  ;;  %v149_v22 = vld [vmem:[%s2649_s1 + $0x8] sm:$0xff] }
   0x7   :  { %v2173_v21 = vld [vmem:[%s2648_s0] sm:$0xff] }
   0x8   :  { %1809 = vmatprep.subr.bf16.mxu0 %v1808_v15 }
   0x9   :  { %1827 = vmatpush3.bf16.msra.mxu1 %v1824_v5 }
   0xa   :  { %1829 = vmatprep.subr.bf16.mxu1 %v1828_v9 }
   0xd   :  { %1831 = vmatpush3.bf16.msra.mxu1 %v1828_v9 }
   0xe   :  { %1833 = vmatprep.subr.bf16.mxu1 %v1832_v12 }
  0x11   :  { %1835 = vmatpush3.bf16.msra.mxu1 %v1832_v12 }
  0x12   :  { %10 = vsyncpa [#allocation3], 0  ;;  %v150_v23 = vld [vmem:[%s2649_s1 + $0x10] sm:$0xff]  ;;  %1811 = vmatpush3.bf16.msra.mxu0 %v1808_v15  ;;  %1692 = vmatprep.mubr.msk.f32.mxu0 %vm66_vm1, %v2173_v21  ;;  %v1816_v24 = vpack.c.bf16 %v26_v20, %v25_v19  ;;  %v151_v25 = vld [vmem:[%s2649_s1 + $0x18] sm:$0xff]  ;;  %vm554_vm2 = vcmask 785408  }
  0x13   :  { %1813 = vmatprep.subr.bf16.mxu0 %v1812_v18  ;;  %v152_v26 = vld [vmem:[%s2649_s1 + $0x20] sm:$0xff]  ;;  %v153_v27 = vld [vmem:[%s2649_s1 + $0x28] sm:$0xff]  ;;  %v154_v28 = vld [vmem:[%s2649_s1 + $0x30] sm:$0xff] }
  0x14   :  { %1712 = vmatmul.mubr.msk.f32.vlgmr.msra.gmra.mrb[0].mxu1 %vm184_vm0, %v149_v22  ;;  %v2202_v29 = vld [vmem:[%s2648_s0 + $0x8] sm:$0xff]  ;;  %v155_v30 = vld [vmem:[%s2649_s1 + $0x38] sm:$0xff]  ;;  %v156_v31 = vld [vmem:[%s2649_s1 + $0x40] sm:$0xff]  ;;  %s2091_s0 = smov [#allocation2]  }
  0x15   :  { %1714 = vmatprep.mubr.msk.f32.mxu1 %vm184_vm0, %v150_v23  ;;  %v157_v32 = vld [vmem:[%s2649_s1 + $0x48] sm:$0xff]  ;;  %v158_v33 = vld [vmem:[%s2649_s1 + $0x50] sm:$0xff]  ;;  %v159_v34 = vld [vmem:[%s2649_s1 + $0x58] sm:$0xff]  ;;  %s1330_s18 = sshll.u32 %s2091_s0, 4  ;;  %s1331_s18 = int_to_ptr.vmem [resolvable:$true] %s1330_s18 }
  0x16   :  { %1815 = vmatpush3.bf16.msra.mxu0 %v1812_v18  ;;  %v160_v35 = vld [vmem:[%s2649_s1 + $0x60] sm:$0xff]  ;;  %v161_v36 = vld [vmem:[%s2649_s1 + $0x68] sm:$0xff]  ;;  %v162_v37 = vld [vmem:[%s2649_s1 + $0x70] sm:$0xff]  ;;  %s2066_s19 = scalar_lea.vmem %s1331_s18, 256  ;;  %p2071_p1 = scmp.lt.s32.totalorder %s1331_s18, %s1331_s18 }
  0x17   :  { %1817 = vmatprep.subr.bf16.mxu0 %v1816_v24  ;;  %v163_v38 = vld [vmem:[%s2649_s1 + $0x78] sm:$0xff]  ;;  %v164_v39 = vld [vmem:[%s2649_s1 + $0x80] sm:$0xff]  ;;  %v165_v40 = vld [vmem:[%s2649_s1 + $0x88] sm:$0xff]  ;;  %p2067_p0 = scmp.ne.s32.totalorder %s1331_s18, %s2066_s19  ;;  %p2072_p2 = scmp.lt.s32.totalorder %s2066_s19, %s2066_s19 }
  0x18   :  { %1715 = vmatmul.mubr.msk.f32.gmra.mrb[2].mxu1 %vm184_vm0, %v151_v25  ;;  %v166_v41 = vld [vmem:[%s2649_s1 + $0x90] sm:$0xff]  ;;  %v167_v42 = vld [vmem:[%s2649_s1 + $0x98] sm:$0xff]  ;;  %v168_v43 = vld [vmem:[%s2649_s1 + $0xa0] sm:$0xff] }
  0x19   :  { %1717 = vmatprep.mubr.msk.f32.mxu1 %vm184_vm0, %v152_v26  ;;  %v169_v44 = vld [vmem:[%s2649_s1 + $0xa8] sm:$0xff]  ;;  %v170_v45 = vld [vmem:[%s2649_s1 + $0xb0] sm:$0xff]  ;;  %v171_v46 = vld [vmem:[%s2649_s1 + $0xb8] sm:$0xff]  ;;  %p2073_p3 = por %p2072_p2, %p2071_p1 }
  0x1a   :  { %1819 = vmatpush3.bf16.msra.mxu0 %v1816_v24  ;;  %v172_v47 = vld [vmem:[%s2649_s1 + $0xc0] sm:$0xff]  ;;  %v173_v48 = vld [vmem:[%s2649_s1 + $0xc8] sm:$0xff]  ;;  %v174_v49 = vld [vmem:[%s2649_s1 + $0xd0] sm:$0xff] }
  0x1b   :  { %v175_v50 = vld [vmem:[%s2649_s1 + $0xd8] sm:$0xff]  ;;  %v176_v51 = vld [vmem:[%s2649_s1 + $0xe0] sm:$0xff]  ;;  %v177_v52 = vld [vmem:[%s2649_s1 + $0xe8] sm:$0xff]  ;;  %p2074_p4 = pnand %p2073_p3, %p2067_p0 }
  0x1c   :  { %1718 = vmatmul.mubr.msk.f32.gmra.mrb[4].mxu1 %vm184_vm0, %v153_v27  ;;  %v178_v53 = vld [vmem:[%s2649_s1 + $0xf0] sm:$0xff]  ;;  %v179_v54 = vld [vmem:[%s2649_s1 + $0xf8] sm:$0xff]  ;;  %vm2367_vm3 = vmpackc.low %vm554_vm2, %vm554_vm2 }
  0x1d   :  { %1720 = vmatprep.mubr.msk.f32.mxu1 %vm184_vm0, %v154_v28  ;;  %1693 = vmatmul.mubr.msk.f32.vlgmr.msra.gmra.mrb[0].mxu0 %vm66_vm1, %v2202_v29  ;;  %v2311_v55 = vld [vmem:[%s2652_s4 + $0x138] ss:$0 sm:$0xff]  ;;  %v1341_v1 = vld [vmem:[%s2652_s4 + $0x130] ss:$0 sm:$0xff] }
  0x1e   :  { %v1377_v7 = vld [vmem:[%s2652_s4 + $0x110] ss:$0 sm:$0xff] }
  0x20   :  { %1721 = vmatmul.mubr.msk.f32.gmra.mrb[6].mxu1 %vm184_vm0, %v155_v30 }
  0x21   :  { %1723 = vmatprep.mubr.msk.f32.mxu1 %vm184_vm0, %v156_v31 }
  0x24   :  { %1724 = vmatmul.mubr.msk.f32.gmra.mrb[8].mxu1 %vm184_vm0, %v157_v32 }
  0x25   :  { %1726 = vmatprep.mubr.msk.f32.mxu1 %vm184_vm0, %v158_v33 }
  0x28   :  { %1727 = vmatmul.mubr.msk.f32.gmra.mrb[10].mxu1 %vm184_vm0, %v159_v34 }
  0x29   :  { %1729 = vmatprep.mubr.msk.f32.mxu1 %vm184_vm0, %v160_v35 }
  0x2c   :  { %1730 = vmatmul.mubr.msk.f32.gmra.mrb[12].mxu1 %vm184_vm0, %v161_v36 }
  0x2d   :  { %1732 = vmatprep.mubr.msk.f32.mxu1 %vm184_vm0, %v162_v37 }
  0x30   :  { %1733 = vmatmul.mubr.msk.f32.gmra.mrb[14].mxu1 %vm184_vm0, %v163_v38 }
  0x31   :  { %1735 = vmatprep.mubr.msk.f32.mxu1 %vm184_vm0, %v164_v39 }
  0x34   :  { %1736 = vmatmul.mubr.msk.f32.gmra.mrb[16].mxu1 %vm184_vm0, %v165_v40 }
  0x35   :  { %1738 = vmatprep.mubr.msk.f32.mxu1 %vm184_vm0, %v166_v41 }
  0x38   :  { %1739 = vmatmul.mubr.msk.f32.gmra.mrb[18].mxu1 %vm184_vm0, %v167_v42 }
  0x39   :  { %1741 = vmatprep.mubr.msk.f32.mxu1 %vm184_vm0, %v168_v43 }
  0x3c   :  { %1742 = vmatmul.mubr.msk.f32.gmra.mrb[20].mxu1 %vm184_vm0, %v169_v44 }
  0x3d   :  { %1744 = vmatprep.mubr.msk.f32.mxu1 %vm184_vm0, %v170_v45 }
  0x40   :  { %1745 = vmatmul.mubr.msk.f32.gmra.mrb[22].mxu1 %vm184_vm0, %v171_v46 }
  0x41   :  { %1747 = vmatprep.mubr.msk.f32.mxu1 %vm184_vm0, %v172_v47 }
  0x44   :  { %1748 = vmatmul.mubr.msk.f32.gmra.mrb[24].mxu1 %vm184_vm0, %v173_v48 }
  0x45   :  { %1750 = vmatprep.mubr.msk.f32.mxu1 %vm184_vm0, %v174_v49 }
  0x48   :  { %1751 = vmatmul.mubr.msk.f32.gmra.mrb[26].mxu1 %vm184_vm0, %v175_v50 }
  0x49   :  { %1753 = vmatprep.mubr.msk.f32.mxu1 %vm184_vm0, %v176_v51 }
  0x4c   :  { %1754 = vmatmul.mubr.msk.f32.gmra.mrb[28].mxu1 %vm184_vm0, %v177_v52 }
  0x4d   :  { %1756 = vmatprep.mubr.msk.f32.mxu1 %vm184_vm0, %v178_v53 }
  0x50   :  { %1757 = vmatmul.mubr.msk.f32.gmra.mrb[30].mxu1 %vm184_vm0, %v179_v54  ;;  %vm1148_vm0 = vcmask 261120  }
  0xe7   :  { %v1713_v56 = vpop.f32.mrb[0].mxu1 }
  0xe8   :  { %v353_v57 = vadd.f32 %v1713_v56, %v2311_v55  ;;  %v347_v58 = vpop.f32.mrb[1].mxu1 }
  0xe9   :  { %v348_v59 = vadd.f32 %v2311_v55, %v347_v58 }
  0xeb   :  { %v2315_v60 = vpack.c.bf16 %v353_v57, %v348_v59  ;;  %v1716_v61 = vpop.f32.mrb[2].mxu1 }
  0xec   :  { %v363_v62 = vadd.f32 %v1716_v61, %v2311_v55  ;;  %v357_v63 = vpop.f32.mrb[3].mxu1 }
  0xed   :  { %v358_v0 = vadd.f32 %v2311_v55, %v357_v63 }
  0xef   :  { %v2322_v2 = vpack.c.bf16 %v363_v62, %v358_v0  ;;  %v1719_v3 = vpop.f32.mrb[4].mxu1 }
  0xf0   :  { %v373_v4 = vadd.f32 %v1719_v3, %v2311_v55  ;;  %v367_v5 = vpop.f32.mrb[5].mxu1  ;;  %v1694_v6 = vpop.f32.mrb[0].mxu0 }
  0xf1   :  { %v368_v8 = vadd.f32 %v2311_v55, %v367_v5  ;;  %v2329_v9 = vadd.f32 %v1694_v6, %v1341_v1  ;;  %v139_v10 = vpop.f32.mrb[1].mxu0 }
  0xf2   :  { %v2331_v11 = vadd.f32 %v1341_v1, %v139_v10 }
  0xf3   :  { %v2333_v12 = vpack.c.bf16 %v373_v4, %v368_v8  ;;  %v1722_v13 = vpop.f32.mrb[6].mxu1  ;;  %v2336_v14 = vmul.f32 %v1377_v7, %v2329_v9 }
  0xf4   :  { %v383_v15 = vadd.f32 %v1722_v13, %v2311_v55  ;;  %v377_v16 = vpop.f32.mrb[7].mxu1  ;;  %v2340_v17 = vmul.f32 %v1377_v7, %v2331_v11 }
  0xf5   :  { %v378_v18 = vadd.f32 %v2311_v55, %v377_v16 }
  0xf6   :  { %1538 = vmatprep.mubr.msk.f32.mxu0 %vm554_vm2, %v2340_v17 }
  0xf7   :  { %v2345_v19 = vpack.c.bf16 %v383_v15, %v378_v18  ;;  %v1725_v20 = vpop.f32.mrb[8].mxu1 }
  0xf8   :  { %v393_v22 = vadd.f32 %v1725_v20, %v2311_v55  ;;  %v387_v23 = vpop.f32.mrb[9].mxu1 }
  0xf9   :  { %v388_v24 = vadd.f32 %v2311_v55, %v387_v23 }
  0xfb   :  { %v2349_v25 = vpack.c.bf16 %v393_v22, %v388_v24  ;;  %v1728_v26 = vpop.f32.mrb[10].mxu1 }
  0xfc   :  { %v403_v27 = vadd.f32 %v1728_v26, %v2311_v55  ;;  %v397_v28 = vpop.f32.mrb[11].mxu1 }
  0xfd   :  { %v398_v30 = vadd.f32 %v2311_v55, %v397_v28 }
  0xff   :  { %v2353_v31 = vpack.c.bf16 %v403_v27, %v398_v30  ;;  %v1731_v32 = vpop.f32.mrb[12].mxu1 }
 0x100   :  { %v413_v33 = vadd.f32 %v1731_v32, %v2311_v55  ;;  %v407_v34 = vpop.f32.mrb[13].mxu1 }
 0x101   :  { %v408_v35 = vadd.f32 %v2311_v55, %v407_v34 }
 0x103   :  { %v2357_v36 = vpack.c.bf16 %v413_v33, %v408_v35  ;;  %v1734_v37 = vpop.f32.mrb[14].mxu1 }
 0x104   :  { %v423_v38 = vadd.f32 %v1734_v37, %v2311_v55  ;;  %v417_v39 = vpop.f32.mrb[15].mxu1 }
 0x105   :  { %v418_v40 = vadd.f32 %v2311_v55, %v417_v39 }
 0x107   :  { %v2361_v41 = vpack.c.bf16 %v423_v38, %v418_v40  ;;  %v1737_v42 = vpop.f32.mrb[16].mxu1 }
 0x108   :  { %v433_v43 = vadd.f32 %v1737_v42, %v2311_v55  ;;  %v427_v44 = vpop.f32.mrb[17].mxu1 }
 0x109   :  { %v428_v45 = vadd.f32 %v2311_v55, %v427_v44 }
 0x10b   :  { %v2371_v47 = vpack.c.bf16 %v433_v43, %v428_v45  ;;  %v1740_v48 = vpop.f32.mrb[18].mxu1 }
 0x10c   :  { %v443_v49 = vadd.f32 %v1740_v48, %v2311_v55  ;;  %v437_v50 = vpop.f32.mrb[19].mxu1 }
 0x10d   :  { %v438_v51 = vadd.f32 %v2311_v55, %v437_v50  ;;  %1838 = vmatprep.subr.msk.bf16.mxu0 %vm2367_vm3, %v2371_v47  ;;  %1885 = vmatprep.subr.bf16.mxu1 %v2371_v47 }
 0x10e   :  { %1841 = vmatpush3.bf16.xpose.msk.msra.mxu0 %vm2367_vm3, %v2315_v60  ;;  %1887 = vmatpush3.bf16.msra.mxu1 %v2315_v60 }
 0x10f   :  { %v2383_v52 = vpack.c.bf16 %v443_v49, %v438_v51  ;;  %v1743_v53 = vpop.f32.mrb[20].mxu1 }
 0x110   :  { %v453_v54 = vadd.f32 %v1743_v53, %v2311_v55  ;;  %v447_v56 = vpop.f32.mrb[21].mxu1 }
 0x111   :  { %v448_v57 = vadd.f32 %v2311_v55, %v447_v56  ;;  %1889 = vmatprep.subr.bf16.mxu1 %v2383_v52  ;;  %1844 = vmatprep.subr.msk.bf16.mxu0 %vm2367_vm3, %v2383_v52 }
 0x112   :  { %1891 = vmatpush3.bf16.msra.mxu1 %v2322_v2 }
 0x113   :  { %v2392_v58 = vpack.c.bf16 %v453_v54, %v448_v57  ;;  %v1746_v59 = vpop.f32.mrb[22].mxu1 }
 0x114   :  { %v463_v61 = vadd.f32 %v1746_v59, %v2311_v55  ;;  %v457_v62 = vpop.f32.mrb[23].mxu1 }
 0x115   :  { %v458_v63 = vadd.f32 %v2311_v55, %v457_v62  ;;  %1893 = vmatprep.subr.bf16.mxu1 %v2392_v58 }
 0x116   :  { %1847 = vmatpush3.bf16.xpose.msk.msra.mxu0 %vm2367_vm3, %v2322_v2  ;;  %1895 = vmatpush3.bf16.msra.mxu1 %v2333_v12 }
 0x117   :  { %v2401_v0 = vpack.c.bf16 %v463_v61, %v458_v63  ;;  %v1749_v1 = vpop.f32.mrb[24].mxu1  ;;  %1850 = vmatprep.subr.msk.bf16.mxu0 %vm2367_vm3, %v2392_v58 }
 0x118   :  { %v473_v3 = vadd.f32 %v1749_v1, %v2311_v55  ;;  %v467_v4 = vpop.f32.mrb[25].mxu1 }
 0x119   :  { %v468_v5 = vadd.f32 %v2311_v55, %v467_v4  ;;  %1897 = vmatprep.subr.bf16.mxu1 %v2401_v0 }
 0x11a   :  { %1899 = vmatpush3.bf16.msra.mxu1 %v2345_v19 }
 0x11b   :  { %v2410_v6 = vpack.c.bf16 %v473_v3, %v468_v5  ;;  %v1752_v7 = vpop.f32.mrb[26].mxu1 }
 0x11c   :  { %v483_v8 = vadd.f32 %v1752_v7, %v2311_v55  ;;  %v477_v10 = vpop.f32.mrb[27].mxu1 }
 0x11d   :  { %v478_v13 = vadd.f32 %v2311_v55, %v477_v10  ;;  %1901 = vmatprep.subr.bf16.mxu1 %v2410_v6 }
 0x11e   :  { %1853 = vmatpush3.bf16.xpose.msk.msra.mxu0 %vm2367_vm3, %v2333_v12  ;;  %1903 = vmatpush3.bf16.msra.mxu1 %v2349_v25 }
 0x11f   :  { %v2419_v15 = vpack.c.bf16 %v483_v8, %v478_v13  ;;  %v1755_v16 = vpop.f32.mrb[28].mxu1  ;;  %1856 = vmatprep.subr.msk.bf16.mxu0 %vm2367_vm3, %v2401_v0 }
 0x120   :  { %v493_v18 = vadd.f32 %v1755_v16, %v2311_v55  ;;  %v487_v20 = vpop.f32.mrb[29].mxu1 }
 0x121   :  { %v488_v22 = vadd.f32 %v2311_v55, %v487_v20  ;;  %1905 = vmatprep.subr.bf16.mxu1 %v2419_v15 }
 0x122   :  { %1907 = vmatpush3.bf16.msra.mxu1 %v2353_v31 }
 0x123   :  { %v2428_v23 = vpack.c.bf16 %v493_v18, %v488_v22  ;;  %v1758_v24 = vpop.f32.mrb[30].mxu1 }
 0x124   :  { %v503_v26 = vadd.f32 %v1758_v24, %v2311_v55  ;;  %v497_v27 = vpop.f32.mrb[31].mxu1 }
 0x125   :  { %v498_v28 = vadd.f32 %v2311_v55, %v497_v27  ;;  %1909 = vmatprep.subr.bf16.mxu1 %v2428_v23  ;;  %v1413_v55 = vld [vmem:[%s2652_s4 + $0x118] ss:$0 sm:$0xff] }
 0x126   :  { %1859 = vmatpush3.bf16.xpose.msk.msra.mxu0 %vm2367_vm3, %v2345_v19  ;;  %1911 = vmatpush3.bf16.msra.mxu1 %v2357_v36  ;;  %v851_v32 = vmul.f32 %v1413_v55, %v2331_v11  ;;  %v852_v11 = vmul.f32 %v1413_v55, %v2329_v9  ;;  %v530_v9 = vld [vmem:[%s2650_s2] sm:$0x3] }
 0x127   :  { %v2437_v30 = vpack.c.bf16 %v503_v26, %v498_v28  ;;  %1862 = vmatprep.subr.msk.bf16.mxu0 %vm2367_vm3, %v2410_v6 }
 0x129   :  { %1913 = vmatprep.subr.bf16.mxu1 %v2437_v30 }
 0x12a   :  { %1915 = vmatpush3.bf16.msra.mxu1 %v2361_v41 }
 0x12b   :  { %1965 = vmatprep.subr.bf16.mxu1 %v2371_v47 }
 0x12e   :  { %1865 = vmatpush3.bf16.xpose.msk.msra.mxu0 %vm2367_vm3, %v2349_v25 }
 0x12f   :  { %1868 = vmatprep.subr.msk.bf16.mxu0 %vm2367_vm3, %v2419_v15 }
 0x136   :  { %1871 = vmatpush3.bf16.xpose.msk.msra.mxu0 %vm2367_vm3, %v2353_v31 }
 0x137   :  { %1874 = vmatprep.subr.msk.bf16.mxu0 %vm2367_vm3, %v2428_v23 }
 0x13e   :  { %1877 = vmatpush3.bf16.xpose.msk.msra.mxu0 %vm2367_vm3, %v2357_v36 }
 0x13f   :  { %1880 = vmatprep.subr.msk.bf16.mxu0 %vm2367_vm3, %v2437_v30 }
 0x146   :  { %1883 = vmatpush3.bf16.xpose.msk.msra.mxu0 %vm2367_vm3, %v2361_v41 }
 0x147   :  { %1918 = vmatprep.subr.msk.bf16.mxu0 %vm2367_vm3, %v2371_v47 }
 0x14d   :  { %1539 = vmatmul.mubr.msk.f32.vlgmr.msra.gmra.mrb[2].mxu0 %vm554_vm2, %v2340_v17 }
 0x14e   :  { %1540 = vmatprep.mubr.msk.f32.mxu0 %vm554_vm2, %v2336_v14  ;;  %1921 = vmatpush3.bf16.xpose.msk.msra.mxu0 %vm2367_vm3, %v2315_v60 }
 0x14f   :  { %1924 = vmatprep.subr.msk.bf16.mxu0 %vm2367_vm3, %v2383_v52 }
 0x151   :  { %1541 = vmatmul.mubr.msk.f32.gmra.mrb[4].mxu0 %vm554_vm2, %v2336_v14  ;;  %v506_v14 = vlaneseq }
 0x152   :  { %1612 = vmatprep.mubr.msk.f32.mxu0 %vm554_vm2, %v851_v32 }
 0x153   :  { %v507_v17 = vshrl.u32 %v506_v14, 7  ;;  %v510_v35 = vand.u32 127, %v506_v14 }
 0x155   :  { %v518_v33 = vadd.s32 1, %v507_v17  ;;  %v508_v34 = vadd.s32 8, %v507_v17  ;;  %v512_v37 = vmul.u32 16, %v507_v17  ;;  %v511_v40 = vadd.s32 128, %v510_v35 }
 0x156   :  { %1927 = vmatpush3.bf16.xpose.msk.msra.mxu0 %vm2367_vm3, %v2322_v2  ;;  %v534_v42 = vsub.s32 0, %v507_v17  ;;  %v538_v43 = vsub.s32 1, %v507_v17 }
 0x157   :  { %1930 = vmatprep.subr.msk.bf16.mxu0 %vm2367_vm3, %v2392_v58  ;;  %v520_v38 = vmul.u32 16, %v518_v33  ;;  %v519_v39 = vadd.s32 1, %v508_v34  ;;  %vm514_vm4 = vcmp.ge.s32.totalorder %v510_v35, %v512_v37  ;;  %v513_v44 = vmul.u32 16, %v508_v34 }
 0x158   :  { %vm515_vm6 = vcmp.ge.s32.totalorder %v511_v40, %v512_v37  ;;  %v535_v46 = vrot.slane %v530_v9, %v534_v42  ;;  %v539_v47 = vrot.slane %v530_v9, %v538_v43 }
 0x159   :  { %vm522_vm5 = vcmp.lt.s32.totalorder %v510_v35, %v520_v38  ;;  %v521_v45 = vmul.u32 16, %v519_v39  ;;  %vm523_vm7 = vcmp.lt.s32.totalorder %v511_v40, %v520_v38  ;;  %vm516_vm10 = vcmp.ge.s32.totalorder %v510_v35, %v513_v44 }
 0x15a   :  { %vm526_vm8 = vmand %vm514_vm4, %vm522_vm5  ;;  %vm517_vm12 = vcmp.ge.s32.totalorder %v511_v40, %v513_v44 }
 0x15b   :  { %vm527_vm9 = vmand %vm515_vm6, %vm523_vm7  ;;  %vm524_vm11 = vcmp.lt.s32.totalorder %v510_v35, %v521_v45  ;;  %vm525_vm13 = vcmp.lt.s32.totalorder %v511_v40, %v521_v45  ;;  %v542_v48 = vsel %vm526_vm8, %v535_v46, -1e+30 }
 0x15c   :  { %v543_v49 = vsel %vm527_vm9, %v539_v47, -1e+30  ;;  %vm528_vm14 = vmand %vm516_vm10, %vm524_vm11 }
 0x15d   :  { %vm529_vm15 = vmand %vm517_vm12, %vm525_vm13  ;;  %v544_v56 = vsel %vm528_vm14, %v535_v46, -1e+30 }
 0x15e   :  { %1933 = vmatpush3.bf16.xpose.msk.msra.mxu0 %vm2367_vm3, %v2333_v12  ;;  %v545_v57 = vsel %vm529_vm15, %v539_v47, -1e+30 }
 0x15f   :  { %1936 = vmatprep.subr.msk.bf16.mxu0 %vm2367_vm3, %v2401_v0 }
 0x166   :  { %1939 = vmatpush3.bf16.xpose.msk.msra.mxu0 %vm2367_vm3, %v2345_v19 }
 0x167   :  { %1942 = vmatprep.subr.msk.bf16.mxu0 %vm2367_vm3, %v2410_v6 }
 0x16e   :  { %1945 = vmatpush3.bf16.xpose.msk.msra.mxu0 %vm2367_vm3, %v2349_v25 }
 0x16f   :  { %1948 = vmatprep.subr.msk.bf16.mxu0 %vm2367_vm3, %v2419_v15 }
 0x176   :  { %1951 = vmatpush3.bf16.xpose.msk.msra.mxu0 %vm2367_vm3, %v2353_v31 }
 0x177   :  { %1954 = vmatprep.subr.msk.bf16.mxu0 %vm2367_vm3, %v2428_v23 }
 0x17e   :  { %1957 = vmatpush3.bf16.xpose.msk.msra.mxu0 %vm2367_vm3, %v2357_v36 }
 0x17f   :  { %1960 = vmatprep.subr.msk.bf16.mxu0 %vm2367_vm3, %v2437_v30 }
 0x186   :  { %1963 = vmatpush3.bf16.xpose.msk.msra.mxu0 %vm2367_vm3, %v2361_v41 }
 0x18d   :  { %1613 = vmatmul.mubr.msk.f32.vlgmr.msra.gmra.mrb[6].mxu0 %vm554_vm2, %v851_v32 }
 0x18e   :  { %1614 = vmatprep.mubr.msk.f32.mxu0 %vm554_vm2, %v852_v11 }
 0x191   :  { %1615 = vmatmul.mubr.msk.f32.gmra.mrb[8].mxu0 %vm554_vm2, %v852_v11 }
 0x220   :  { %v723_v50 = vpop.f32.mrb[2].mxu0 }
 0x221   :  { %v724_v51 = vadd.f32 %v723_v50, %v542_v48  ;;  %v725_v53 = vpop.f32.mrb[3].mxu0 }
 0x222   :  { %v726_v54 = vadd.f32 %v725_v53, %v543_v49 }
 0x224   :  { %v729_v59 = vpop.f32.mrb[4].mxu0  ;;  %v734_v61 = vmax.f32 %v724_v51, %v726_v54 }
 0x225   :  { %v730_v62 = vadd.f32 %v729_v59, %v544_v56  ;;  %v731_v63 = vpop.f32.mrb[5].mxu0 }
 0x226   :  { %v732_v1 = vadd.f32 %v731_v63, %v545_v57  ;;  %735 = vmax.xlane.f32.xlu0 %v734_v61 }
 0x228   :  { %v737_v3 = vmax.f32 %v730_v62, %v732_v1 }
 0x22a   :  { %738 = vmax.xlane.f32.xlu0 %v737_v3 }
 0x260   :  { %v925_v4 = vpop.f32.mrb[6].mxu0 }
 0x261   :  { %v926_v5 = vadd.f32 %v925_v4, %v542_v48  ;;  %v927_v7 = vpop.f32.mrb[7].mxu0 }
 0x262   :  { %v928_v8 = vadd.f32 %v927_v7, %v543_v49 }
 0x264   :  { %v931_v10 = vpop.f32.mrb[8].mxu0  ;;  %v936_v13 = vmax.f32 %v926_v5, %v928_v8 }
 0x265   :  { %v932_v16 = vadd.f32 %v931_v10, %v544_v56  ;;  %v933_v18 = vpop.f32.mrb[9].mxu0 }
 0x266   :  { %v934_v20 = vadd.f32 %v933_v18, %v545_v57  ;;  %937 = vmax.xlane.f32.xlu1 %v936_v13  ;;  %v41_v13 = vld [vmem:[%s2652_s4 + $0xa0] sm:$0xff] }
 0x268   :  { %v939_v22 = vmax.f32 %v932_v16, %v934_v20 }
 0x26a   :  { %940 = vmax.xlane.f32.xlu1 %v939_v22  ;;  %v44_v22 = vld [vmem:[%s2652_s4 + $0xb8] sm:$0xff] }
 0x2b3   :  { %v736_v24 = vpop.xlane.xlu0 %735 }
 0x2b4   :  { %v740_v26 = vsub.f32 %v724_v51, %v736_v24  ;;  %v741_v27 = vsub.f32 %v726_v54, %v736_v24 }
 0x2b6   :  { %v744_v28 = vmul.f32 1.442695, %v740_v26  ;;  %v746_v55 = vmul.f32 1.442695, %v741_v27  ;;  %v45_v26 = vld [vmem:[%s2652_s4 + $0xc0] sm:$0xff]  ;;  %v46_v27 = vld [vmem:[%s2652_s4 + $0xc8] sm:$0xff] }
 0x2b7   :  { %v739_v32 = vpop.xlane.xlu0 %738 }
 0x2b8   :  { %2042 = vpow2.f32 %v744_v28  ;;  %v742_v11 = vsub.f32 %v730_v62, %v739_v32  ;;  %v743_v14 = vsub.f32 %v732_v1, %v739_v32  ;;  %v2016_v28 = vpack.c.bf16 %v46_v27, %v45_v26  ;;  %v48_v32 = vld [vmem:[%s2652_s4 + $0xd8] sm:$0xff] }
 0x2b9   :  { %2044 = vpow2.f32 %v746_v55  ;;  %v47_v55 = vld [vmem:[%s2652_s4 + $0xd0] sm:$0xff] }
 0x2ba   :  { %v748_v17 = vmul.f32 1.442695, %v742_v11  ;;  %v750_v33 = vmul.f32 1.442695, %v743_v14  ;;  %v2020_v11 = vpack.c.bf16 %v48_v32, %v47_v55  ;;  %v1135_v14 = vld [vmem:[%s2651_s3 + $0x8] sm:$0xff] }
 0x2bc   :  { %2046 = vpow2.f32 %v748_v17  ;;  %v1134_v17 = vld [vmem:[%s2651_s3] sm:$0xff] }
 0x2bd   :  { %2048 = vpow2.f32 %v750_v33  ;;  %v2090_v33 = vmov 0  }
 0x2be   :  { %2041 = vset.pattern.permute.xlu1 %v2090_v33  ;;  %2040 = vset.pattern.permute.xlu0 %v2090_v33 }
 0x2c2   :  { %v2043_v34 = vpop.eup %2042 }
 0x2c3   :  { %v2045_v35 = vpop.eup %2044 }
 0x2c4   :  { %v752_v37 = vadd.f32 %v2045_v35, %v2043_v34 }
 0x2c6   :  { %v2047_v38 = vpop.eup %2046  ;;  %753 = vadd.xlane.f32.xlu0 %v752_v37 }
 0x2c7   :  { %v2049_v39 = vpop.eup %2048 }
 0x2c8   :  { %v755_v40 = vadd.f32 %v2049_v39, %v2047_v38 }
 0x2ca   :  { %756 = vadd.xlane.f32.xlu1 %v755_v40 }
 0x2f3   :  { %v938_v42 = vpop.xlane.xlu1 %937 }
 0x2f4   :  { %v942_v9 = vsub.f32 %v926_v5, %v938_v42  ;;  %v943_v43 = vsub.f32 %v928_v8, %v938_v42  ;;  %v40_v8 = vld [vmem:[%s2652_s4 + $0x98] sm:$0xff] }
 0x2f6   :  { %v946_v44 = vmul.f32 1.442695, %v942_v9  ;;  %v948_v45 = vmul.f32 1.442695, %v943_v43  ;;  %v1412_v9 = vld [vmem:[%s2652_s4 + $0x120] ss:$0 sm:$0xff] }
 0x2f7   :  { %v941_v46 = vpop.xlane.xlu1 %940  ;;  %v1448_v43 = vld [vmem:[%s2652_s4 + $0x128] ss:$0 sm:$0xff] }
 0x2f8   :  { %2050 = vpow2.f32 %v946_v44  ;;  %v944_v47 = vsub.f32 %v932_v16, %v941_v46  ;;  %v945_v48 = vsub.f32 %v934_v20, %v941_v46  ;;  %v42_v16 = vld [vmem:[%s2652_s4 + $0xa8] sm:$0xff]  ;;  %v43_v20 = vld [vmem:[%s2652_s4 + $0xb0] sm:$0xff] }
 0x2f9   :  { %2052 = vpow2.f32 %v948_v45  ;;  %v2008_v18 = vpack.c.bf16 %v42_v16, %v41_v13  ;;  %v2012_v24 = vpack.c.bf16 %v44_v22, %v43_v20 }
 0x2fa   :  { %v950_v49 = vmul.f32 1.442695, %v944_v47  ;;  %v952_v50 = vmul.f32 1.442695, %v945_v48 }
 0x2fc   :  { %2054 = vpow2.f32 %v950_v49 }
 0x2fd   :  { %2056 = vpow2.f32 %v952_v50 }
 0x302   :  { %v2051_v51 = vpop.eup %2050 }
 0x303   :  { %v2053_v53 = vpop.eup %2052 }
 0x304   :  { %v954_v54 = vadd.f32 %v2053_v53, %v2051_v51 }
 0x306   :  { %v2055_v56 = vpop.eup %2054  ;;  %955 = vadd.xlane.f32.xlu0 %v954_v54  ;;  %v50_v54 = vld [vmem:[%s2652_s4 + $0xe8] sm:$0xff] }
 0x307   :  { %v2057_v57 = vpop.eup %2056 }
 0x308   :  { %v957_v59 = vadd.f32 %v2057_v57, %v2055_v56 }
 0x30a   :  { %958 = vadd.xlane.f32.xlu1 %v957_v59 }
 0x31b   :  { %1143 = vperm.xlu1 %2041, %v1135_v14  }
 0x31c   :  { %1138 = vperm.xlu0 %2040, %v1134_v17  }
 0x353   :  { %v754_v61 = vpop.xlane.xlu0 %753 }
 0x354   :  { %2058 = vrcp.f32 %v754_v61 }
 0x357   :  { %v757_v62 = vpop.xlane.xlu1 %756 }
 0x358   :  { %2060 = vrcp.f32 %v757_v62  ;;  %v51_v62 = vld [vmem:[%s2652_s4 + $0xf0] sm:$0xff] }
 0x35e   :  { %v2059_v63 = vpop.eup %2058 }
 0x35f   :  { %v760_v1 = vmul.f32 %v2059_v63, %v2043_v34  ;;  %v761_v3 = vmul.f32 %v2059_v63, %v2045_v35  ;;  %v52_v63 = vld [vmem:[%s2652_s4 + $0xf8] sm:$0xff] }
 0x361   :  { %828 = vmatprep.mubr.f32.mxu1 %v761_v3  ;;  %v54_v3 = vld [vmem:[%s2652_s4 + $0x108] sm:$0xff] }
 0x362   :  { %v2061_v4 = vpop.eup %2060  ;;  %829 = vmatmul.mubr.f32.vlgmr.msra.gmra.mrb[32].mxu1 %v760_v1  ;;  %v2028_v1 = vpack.c.bf16 %v52_v63, %v51_v62 }
 0x363   :  { %1967 = vmatpush3.bf16.msra.mxu1 %v2315_v60  ;;  %v763_v5 = vmul.f32 %v2061_v4, %v2049_v39  ;;  %v762_v7 = vmul.f32 %v2061_v4, %v2047_v38 }
 0x364   :  { %1969 = vmatprep.subr.bf16.mxu1 %v2383_v52  ;;  %2029 = vmatprep.subr.bf16.mxu0 %v2028_v1 }
 0x365   :  { %833 = vmatprep.mubr.f32.mxu1 %v763_v5  ;;  %2031 = vmatpush3.bf16.msra.mxu0 %v2028_v1  ;;  %v1449_v5 = vld [vmem:[%s2652_s4 + $0x140] ss:$0 sm:$0xff] }
 0x366   :  { %834 = vmatmul.mubr.f32.gmra.mrb[34].mxu1 %v762_v7 }
 0x367   :  { %1971 = vmatpush3.bf16.msra.mxu1 %v2322_v2 }
 0x368   :  { %1973 = vmatprep.subr.bf16.mxu1 %v2392_v58 }
 0x36b   :  { %1975 = vmatpush3.bf16.msra.mxu1 %v2333_v12 }
 0x36c   :  { %1977 = vmatprep.subr.bf16.mxu1 %v2401_v0  ;;  %v37_v0 = vld [vmem:[%s2652_s4 + $0x80] sm:$0xff] }
 0x36f   :  { %1979 = vmatpush3.bf16.msra.mxu1 %v2345_v19 }
 0x370   :  { %1981 = vmatprep.subr.bf16.mxu1 %v2410_v6 }
 0x373   :  { %1983 = vmatpush3.bf16.msra.mxu1 %v2349_v25 }
 0x374   :  { %1985 = vmatprep.subr.bf16.mxu1 %v2419_v15  ;;  %v38_v15 = vld [vmem:[%s2652_s4 + $0x88] sm:$0xff] }
 0x377   :  { %1987 = vmatpush3.bf16.msra.mxu1 %v2353_v31 }
 0x378   :  { %1989 = vmatprep.subr.bf16.mxu1 %v2428_v23  ;;  %v2000_v23 = vpack.c.bf16 %v38_v15, %v37_v0 }
 0x37b   :  { %1991 = vmatpush3.bf16.msra.mxu1 %v2357_v36  ;;  %v35_v36 = vld [vmem:[%s2652_s4 + $0x70] sm:$0xff] }
 0x37c   :  { %1993 = vmatprep.subr.bf16.mxu1 %v2437_v30  ;;  %v39_v30 = vld [vmem:[%s2652_s4 + $0x90] sm:$0xff] }
 0x37d   :  { %v2004_v10 = vpack.c.bf16 %v40_v8, %v39_v30  ;;  %v1455_v8 = vld [vmem:[%s2652_s4 + $0x150] ss:$0 sm:$0xff] }
 0x37f   :  { %1995 = vmatpush3.bf16.msra.mxu1 %v2361_v41  ;;  %v36_v41 = vld [vmem:[%s2652_s4 + $0x78] sm:$0xff] }
 0x380   :  { %v1996_v6 = vpack.c.bf16 %v36_v41, %v35_v36 }
 0x382   :  { %1997 = vmatprep.subr.bf16.mxu1 %v1996_v6 }
 0x393   :  { %v956_v60 = vpop.xlane.xlu0 %955 }
 0x394   :  { %2062 = vrcp.f32 %v956_v60 }
 0x397   :  { %v959_v2 = vpop.xlane.xlu1 %958 }
 0x398   :  { %2064 = vrcp.f32 %v959_v2 }
 0x39e   :  { %v2063_v12 = vpop.eup %2062 }
 0x39f   :  { %v962_v19 = vmul.f32 %v2063_v12, %v2051_v51  ;;  %v963_v52 = vmul.f32 %v2063_v12, %v2053_v53  ;;  %v49_v53 = vld [vmem:[%s2652_s4 + $0xe0] sm:$0xff]  ;;  %v1144_v12 = vpop.permute.xlu1 %1143 }
 0x3a0   :  { %v2024_v61 = vpack.c.bf16 %v50_v54, %v49_v53 }
 0x3a1   :  { %1030 = vmatprep.mubr.f32.mxu1 %v963_v52 }
 0x3a2   :  { %v2065_v25 = vpop.eup %2064  ;;  %1031 = vmatmul.mubr.f32.vlgmr.msra.gmra.mrb[36].mxu1 %v962_v19  ;;  %v1139_v19 = vpop.permute.xlu0 %1138 }
 0x3a3   :  { %v965_v58 = vmul.f32 %v2065_v25, %v2057_v57  ;;  %v964_v31 = vmul.f32 %v2065_v25, %v2055_v56  ;;  %1999 = vmatpush3.bf16.msra.mxu1 %v1996_v6 }
 0x3a4   :  { %2001 = vmatprep.subr.bf16.mxu1 %v2000_v23 }
 0x3a5   :  { %1035 = vmatprep.mubr.f32.mxu1 %v965_v58  ;;  %v1454_v58 = vld [vmem:[%s2652_s4 + $0x148] ss:$0 sm:$0xff] }
 0x3a6   :  { %1036 = vmatmul.mubr.f32.gmra.mrb[38].mxu1 %v964_v31 }
 0x3a7   :  { %2003 = vmatpush3.bf16.msra.mxu1 %v2000_v23 }
 0x3a8   :  { %2005 = vmatprep.subr.bf16.mxu1 %v2004_v10 }
 0x3ab   :  { %2007 = vmatpush3.bf16.msra.mxu1 %v2004_v10 }
 0x3ac   :  { %2009 = vmatprep.subr.bf16.mxu1 %v2008_v18 }
 0x3af   :  { %2011 = vmatpush3.bf16.msra.mxu1 %v2008_v18 }
 0x3b0   :  { %2013 = vmatprep.subr.bf16.mxu1 %v2012_v24 }
 0x3b3   :  { %2015 = vmatpush3.bf16.msra.mxu1 %v2012_v24 }
 0x3b4   :  { %2017 = vmatprep.subr.bf16.mxu1 %v2016_v28 }
 0x3b7   :  { %2019 = vmatpush3.bf16.msra.mxu1 %v2016_v28 }
 0x3b8   :  { %2021 = vmatprep.subr.bf16.mxu1 %v2020_v11 }
 0x435   :  { %v1574_v34 = vpop.f32.mrb[32].mxu1 }
 0x436   :  { %v1575_v35 = vpop.f32.mrb[33].mxu1 }
 0x437   :  { %v1576_v37 = vadd.f32 %v1575_v35, %v1574_v34 }
 0x439   :  { %v1577_v38 = vpop.f32.mrb[34].mxu1  ;;  %v843_v46 = vmul.f32 %v1576_v37, %v1412_v9 }
 0x43a   :  { %v1578_v39 = vpop.f32.mrb[35].mxu1 }
 0x43b   :  { %v1579_v40 = vadd.f32 %v1578_v39, %v1577_v38 }
 0x43d   :  { %v844_v56 = vmul.f32 %v1579_v40, %v1412_v9 }
 0x475   :  { %v1648_v42 = vpop.f32.mrb[36].mxu1 }
 0x476   :  { %v1649_v44 = vpop.f32.mrb[37].mxu1 }
 0x477   :  { %v1650_v45 = vadd.f32 %v1649_v44, %v1648_v42 }
 0x479   :  { %v1045_v47 = vmul.f32 %v1650_v45, %v1448_v43  ;;  %v1651_v48 = vpop.f32.mrb[38].mxu1 }
 0x47a   :  { %v1652_v49 = vpop.f32.mrb[39].mxu1 }
 0x47b   :  { %v1047_v50 = vadd.f32 %v1045_v47, %v843_v46  ;;  %v1653_v51 = vadd.f32 %v1652_v49, %v1651_v48 }
 0x47d   :  { %v1046_v57 = vmul.f32 %v1653_v51, %v1448_v43  ;;  %1783 = vmatprep.mubr.msk.f32.mxu1 %vm554_vm2, %v1047_v50 }
 0x47f   :  { %v1048_v59 = vadd.f32 %v1046_v57, %v844_v56 }
 0x481   :  { %1784 = vmatmul.mubr.msk.f32.vlgmr.msra.gmra.mrb[40].mxu1 %vm554_vm2, %v1048_v59 }
 0x482   :  { %2023 = vmatpush3.bf16.msra.mxu1 %v2020_v11  ;;  %1794 = vmatprep.mubr.msk.f32.mxu1 %vm1148_vm0, %v2173_v21  ;;  %v53_v21 = vld [vmem:[%s2652_s4 + $0x100] sm:$0xff] }
 0x483   :  { %2025 = vmatprep.subr.bf16.mxu1 %v2024_v61 }
 0x486   :  { %2027 = vmatpush3.bf16.msra.mxu1 %v2024_v61 }
 0x489   :  { %1795 = vmatmul.mubr.msk.f32.vlgmr.msra.gmra.mrb[42].mxu1 %vm1148_vm0, %v2202_v29  ;;  %v2032_v29 = vpack.c.bf16 %v54_v3, %v53_v21 }
 0x48b   :  { %2033 = vmatprep.subr.bf16.mxu0 %v2032_v29 }
 0x48c   :  { %2035 = vmatpush3.bf16.msra.mxu0 %v2032_v29 }
 0x554   :  { %v1785_v4 = vpop.f32.mrb[40].mxu1 }
 0x555   :  { %v1125_v7 = vpop.f32.mrb[41].mxu1  ;;  %v1131_v60 = vadd.f32 %v1785_v4, %v1449_v5 }
 0x556   :  { %v1126_v2 = vadd.f32 %v1449_v5, %v1125_v7 }
 0x557   :  { %v1147_v52 = vmul.f32 %v1144_v12, %v1131_v60 }
 0x558   :  { %v1146_v25 = vmul.f32 %v1139_v19, %v1126_v2 }
 0x55c   :  { %v1796_v31 = vpop.f32.mrb[42].mxu1 }
 0x55d   :  { %v1229_v36 = vadd.f32 %v1796_v31, %v1147_v52  ;;  %v1219_v41 = vpop.f32.mrb[43].mxu1 }
 0x55e   :  { %v1228_v0 = vadd.f32 %v1219_v41, %v1146_v25 }
 0x55f   :  { %v1235_v6 = vadd.f32 %v1454_v58, %v1229_v36 }
 0x560   :  { %v1234_v15 = vadd.f32 %v1454_v58, %v1228_v0 }
 0x561   :  { %v1237_v30 = vmax.f32 %v1235_v6, 0.0 }
 0x562   :  { %v1236_v23 = vmax.f32 %v1234_v15, 0.0 }
 0x564   :  { %1805 = vmatprep.mubr.msk.f32.mxu0 %vm1148_vm0, %v1236_v23 }
 0x565   :  { %1806 = vmatmul.mubr.msk.f32.vlgmr.msra.gmra.mrb[10].mxu0 %vm1148_vm0, %v1237_v30 }
 0x638   :  { %v1807_v10 = vpop.f32.mrb[10].mxu0 }
 0x639   :  { %v1320_v13 = vadd.f32 %v1807_v10, %v1455_v8  ;;  %v1314_v16 = vpop.f32.mrb[11].mxu0 }
 0x63a   :  { %v1315_v18 = vadd.f32 %v1455_v8, %v1314_v16 }
 0x63b   :  { %1324 = vst [vmem:[#allocation2 + $0x8] sm:$0xff] %v1320_v13 }
 0x63c   :  { %1323 = vst [vmem:[#allocation2] sm:$0xff] %v1315_v18 }
 0x63d   :  { %2077 = shalt.err (!%p2074_p4)
}
 0x63e   :  { %s2078_s4 = scalar_lea.hbm %s2653_s5, 256 }
 0x63f   :  { %p2079_p5 = scmp.ne.s32.totalorder %s2653_s5, %s2078_s4  ;;  %p2082_p6 = scmp.lt.u32.totalorder %s2078_s4, %s2653_s5 }
 0x641   :  { %p2084_p7 = pnand %p2082_p6, %p2079_p5 }
 0x643   :  { %2087 = shalt.err (!%p2084_p7)
}
 0x644   :  { %s2092_s25 = smov 128   ;;  %s2093_s26 = smov 8  }
 0x645   :  { %1336 = dma.vmem_to_hbm [thread:$0]  %s1331_s18, 256, %s2653_s5, [#allocation3], %s2092_s25, %s2092_s25, %s2093_s26  }
 0x646   :  { %2088 = dma.done.wait [#allocation3], 256  }
 0x647   :  { %2089 = vsyncadd [#allocation3], 4294967040 }
 0x648   :  { %1340 = vsyncpa [#allocation3], 1 }

</bundles_post_ra>
